<compile_context>
chip_gen: v5e
topology: v5e:2x2
jax: 0.10.0
libtpu: 0.0.40
codegen_flags: <defaults>
</compile_context>

<pallas_src>
import functools

import jax
import jax.numpy as jnp
from jax import lax
from jax.experimental import pallas as pl
from jax.experimental.pallas import tpu as pltpu

EPSILON = 1e-06
# Matches the PyTorch spec: torch.clamp(log_std, min=MIN_LOG_STD, max=MAX_LOG_STD)
MAX_LOG_STD = 20.0
MIN_LOG_STD = -2.0


def gaussian_policy_kernel(x_ref, w1_ref, b1_ref, w2_ref, b2_ref,
                           wh_ref, bh_ref, out_ref, *, num_actions):
    x = x_ref[...]

    # linear1 + relu
    h1 = jnp.dot(x, w1_ref[...], preferred_element_type=jnp.float32) + b1_ref[...]
    h1 = jnp.maximum(h1, 0.0)

    # linear2 + relu
    h2 = jnp.dot(h1, w2_ref[...], preferred_element_type=jnp.float32) + b2_ref[...]
    h2 = jnp.maximum(h2, 0.0)

    # Fused heads: one matmul produces [mean | log_std] side by side.
    heads = jnp.dot(h2, wh_ref[...], preferred_element_type=jnp.float32) + bh_ref[...]

    # Clamp only the log_std half (columns >= num_actions) — VPU select, no lane slicing.
    col = lax.broadcasted_iota(jnp.int32, heads.shape, dimension=1)
    clamped = jnp.clip(heads, MIN_LOG_STD, MAX_LOG_STD)
    heads = jnp.where(col >= num_actions, clamped, heads)

    out_ref[...] = heads.astype(out_ref.dtype)


def _round_up(x, m):
    return (x + m - 1) // m * m


def gaussian_policy_forward(state, params, *, batch_tile=128):
    """Full MLP forward (2 hidden layers + fused mean/log_std heads) in one Pallas kernel."""
    B, num_inputs = state.shape
    hidden_dim = params["w1"].shape[1]
    num_actions = params["wm"].shape[1]

    # Pack the two heads into one weight / bias (single MXU pass, 2x output lane width).
    wh = jnp.concatenate([params["wm"], params["ws"]], axis=1)   # [hidden, 2A]
    bh = jnp.concatenate([params["bm"], params["bs"]], axis=1)   # [1, 2A]

    # Batch tile: 8-sublane aligned, capped at batch_tile (128 matches v5e MXU; fine on v6e/v7x
    # at these tiny feature dims and stays far under the 64 MiB v7x VMEM budget).
    tb = min(batch_tile, _round_up(B, 8))
    b_pad = _round_up(B, tb)
    if b_pad != B:
        state = jnp.pad(state, ((0, b_pad - B), (0, 0)))

    def const(i):
        return (0, 0)

    out = pl.pallas_call(
        functools.partial(gaussian_policy_kernel, num_actions=num_actions),
        out_shape=jax.ShapeDtypeStruct((b_pad, 2 * num_actions), jnp.float32),
        grid=(b_pad // tb,),
        in_specs=[
            # Activation stream: tiled along batch, auto double-buffered.
            pl.BlockSpec((tb, num_inputs), lambda i: (i, 0)),
            # Weights / biases: constant block index -> fetched once, VMEM-resident.
            pl.BlockSpec((num_inputs, hidden_dim), const),
            pl.BlockSpec((1, hidden_dim), const),
            pl.BlockSpec((hidden_dim, hidden_dim), const),
            pl.BlockSpec((1, hidden_dim), const),
            pl.BlockSpec((hidden_dim, 2 * num_actions), const),
            pl.BlockSpec((1, 2 * num_actions), const),
        ],
        out_specs=pl.BlockSpec((tb, 2 * num_actions), lambda i: (i, 0)),
        compiler_params=pltpu.CompilerParams(
            dimension_semantics=("parallel",)),
    )(state, params["w1"], params["b1"], params["w2"], params["b2"], wh, bh)

    out = out[:B]
    mean = out[:, :num_actions]
    log_std = out[:, num_actions:]
    return mean, log_std


def init_params(key, num_inputs, num_actions, hidden_dim):
    """Deterministic Xavier-uniform init (mirrors the torch init_weights intent)."""
    def xavier(key, shape):
        fan_in, fan_out = shape
        limit = jnp.sqrt(6.0 / (fan_in + fan_out))
        return jax.random.uniform(key, shape, jnp.float32, -limit, limit)

    k1, k2, k3, k4 = jax.random.split(key, 4)
    return {
        # stored as [in, out] (transposed vs. torch's [out, in])
        "w1": xavier(k1, (num_inputs, hidden_dim)),
        "b1": jnp.zeros((1, hidden_dim), jnp.float32),
        "w2": xavier(k2, (hidden_dim, hidden_dim)),
        "b2": jnp.zeros((1, hidden_dim), jnp.float32),
        "wm": xavier(k3, (hidden_dim, num_actions)),
        "bm": jnp.zeros((1, num_actions), jnp.float32),
        "ws": xavier(k4, (hidden_dim, num_actions)),
        "bs": jnp.zeros((1, num_actions), jnp.float32),
    }


def reference_forward(state, params):
    h1 = jnp.maximum(state @ params["w1"] + params["b1"], 0.0)
    h2 = jnp.maximum(h1 @ params["w2"] + params["b2"], 0.0)
    mean = h2 @ params["wm"] + params["bm"]
    log_std = jnp.clip(h2 @ params["ws"] + params["bs"], MIN_LOG_STD, MAX_LOG_STD)
    return mean, log_std


if __name__ == "__main__":
    # TODO(synk): the stochastic `sample()` method (rsample + tanh-squash log-prob)
    # is host-side distribution logic; only the deterministic forward() is kernelized.
    key = jax.random.PRNGKey(0)
    k_params, k_state, k_state2 = jax.random.split(key, 3)

    batch, num_inputs, num_actions, hidden_dim = 2, 16, 8, 32
    params = init_params(k_params, num_inputs, num_actions, hidden_dim)
    state = jax.random.normal(k_state, (batch, num_inputs), jnp.float32)

    # Small batch (pads to one 8-row tile, grid=(1,)).
    mean, log_std = gaussian_policy_forward(state, params)
    jax.block_until_ready((mean, log_std))

    ref_mean, ref_log_std = reference_forward(state, params)
    assert mean.shape == (batch, num_actions)
    assert log_std.shape == (batch, num_actions)
    assert jnp.allclose(mean, ref_mean, atol=1e-5, rtol=1e-5)
    assert jnp.allclose(log_std, ref_log_std, atol=1e-5, rtol=1e-5)

    # Larger ragged batch to exercise the batch grid + padding path (grid=(3,)).
    big_batch = 260
    state_big = jax.random.normal(k_state2, (big_batch, num_inputs), jnp.float32)
    mean_b, log_std_b = gaussian_policy_forward(state_big, params)
    jax.block_until_ready((mean_b, log_std_b))
    ref_mean_b, ref_log_std_b = reference_forward(state_big, params)
    assert mean_b.shape == (big_batch, num_actions)
    assert jnp.allclose(mean_b, ref_mean_b, atol=1e-5, rtol=1e-5)
    assert jnp.allclose(log_std_b, ref_log_std_b, atol=1e-5, rtol=1e-5)

    print("KERNEL_OK")
</pallas_src>

<mosaic_0001>
module attributes {stable_mosaic.version = 11 : i64} {
  func.func @gaussian_policy_kernel(%arg0: i32, %arg1: memref<8x16xf32, #tpu.memory_space<vmem>>, %arg2: memref<16x32xf32, #tpu.memory_space<vmem>>, %arg3: memref<1x32xf32, #tpu.memory_space<vmem>>, %arg4: memref<32x32xf32, #tpu.memory_space<vmem>>, %arg5: memref<1x32xf32, #tpu.memory_space<vmem>>, %arg6: memref<32x16xf32, #tpu.memory_space<vmem>>, %arg7: memref<1x16xf32, #tpu.memory_space<vmem>>, %arg8: memref<8x16xf32, #tpu.memory_space<vmem>>) attributes {dimension_semantics = [#tpu.dimension_semantics<parallel>], iteration_bounds = array<i64: 1>, scalar_prefetch = 0 : i64, scratch_operands = 0 : i64, tpu.core_type = #tpu.core_type<tc>, window_params = [{transform_indices = @transform_0, window_bounds = array<i64: 8, 16>}, {pipeline_mode = #tpu.pipeline_mode<synchronous>, transform_indices = @transform_1, window_bounds = array<i64: 16, 32>}, {pipeline_mode = #tpu.pipeline_mode<synchronous>, transform_indices = @transform_2, window_bounds = array<i64: 1, 32>}, {pipeline_mode = #tpu.pipeline_mode<synchronous>, transform_indices = @transform_3, window_bounds = array<i64: 32, 32>}, {pipeline_mode = #tpu.pipeline_mode<synchronous>, transform_indices = @transform_4, window_bounds = array<i64: 1, 32>}, {pipeline_mode = #tpu.pipeline_mode<synchronous>, transform_indices = @transform_5, window_bounds = array<i64: 32, 16>}, {pipeline_mode = #tpu.pipeline_mode<synchronous>, transform_indices = @transform_6, window_bounds = array<i64: 1, 16>}, {transform_indices = @transform_7, window_bounds = array<i64: 8, 16>}]} {
    %c0 = arith.constant 0 : index
    %c0_0 = arith.constant 0 : index
    %0 = vector.load %arg1[%c0, %c0_0] : memref<8x16xf32, #tpu.memory_space<vmem>>, vector<8x16xf32>
    %c0_1 = arith.constant 0 : index
    %c0_2 = arith.constant 0 : index
    %1 = vector.load %arg2[%c0_1, %c0_2] : memref<16x32xf32, #tpu.memory_space<vmem>>, vector<16x32xf32>
    %cst = arith.constant dense<0.000000e+00> : vector<8x32xf32>
    %2 = tpu.matmul %0, %1, %cst {dimension_numbers = #tpu.dot_dimension_numbers<[1], [0], [0], [1], [0, 0, 1, 1], [], []>} : vector<8x16xf32>, vector<16x32xf32>, vector<8x32xf32> -> vector<8x32xf32>
    %c0_3 = arith.constant 0 : index
    %c0_4 = arith.constant 0 : index
    %3 = vector.load %arg3[%c0_3, %c0_4] : memref<1x32xf32, #tpu.memory_space<vmem>>, vector<1x32xf32>
    %4 = vector.broadcast %3 : vector<1x32xf32> to vector<8x32xf32>
    %5 = arith.addf %2, %4 : vector<8x32xf32>
    %cst_5 = arith.constant 0.000000e+00 : f32
    %6 = vector.broadcast %cst_5 : f32 to vector<8x32xf32>
    %7 = arith.maximumf %5, %6 : vector<8x32xf32>
    %c0_6 = arith.constant 0 : index
    %c0_7 = arith.constant 0 : index
    %8 = vector.load %arg4[%c0_6, %c0_7] : memref<32x32xf32, #tpu.memory_space<vmem>>, vector<32x32xf32>
    %cst_8 = arith.constant dense<0.000000e+00> : vector<8x32xf32>
    %9 = tpu.matmul %7, %8, %cst_8 {dimension_numbers = #tpu.dot_dimension_numbers<[1], [0], [0], [1], [0, 0, 1, 1], [], []>} : vector<8x32xf32>, vector<32x32xf32>, vector<8x32xf32> -> vector<8x32xf32>
    %c0_9 = arith.constant 0 : index
    %c0_10 = arith.constant 0 : index
    %10 = vector.load %arg5[%c0_9, %c0_10] : memref<1x32xf32, #tpu.memory_space<vmem>>, vector<1x32xf32>
    %11 = vector.broadcast %10 : vector<1x32xf32> to vector<8x32xf32>
    %12 = arith.addf %9, %11 : vector<8x32xf32>
    %cst_11 = arith.constant 0.000000e+00 : f32
    %13 = vector.broadcast %cst_11 : f32 to vector<8x32xf32>
    %14 = arith.maximumf %12, %13 : vector<8x32xf32>
    %c0_12 = arith.constant 0 : index
    %c0_13 = arith.constant 0 : index
    %15 = vector.load %arg6[%c0_12, %c0_13] : memref<32x16xf32, #tpu.memory_space<vmem>>, vector<32x16xf32>
    %cst_14 = arith.constant dense<0.000000e+00> : vector<8x16xf32>
    %16 = tpu.matmul %14, %15, %cst_14 {dimension_numbers = #tpu.dot_dimension_numbers<[1], [0], [0], [1], [0, 0, 1, 1], [], []>} : vector<8x32xf32>, vector<32x16xf32>, vector<8x16xf32> -> vector<8x16xf32>
    %c0_15 = arith.constant 0 : index
    %c0_16 = arith.constant 0 : index
    %17 = vector.load %arg7[%c0_15, %c0_16] : memref<1x16xf32, #tpu.memory_space<vmem>>, vector<1x16xf32>
    %18 = vector.broadcast %17 : vector<1x16xf32> to vector<8x16xf32>
    %19 = arith.addf %16, %18 : vector<8x16xf32>
    %20 = tpu.iota {dimensions = array<i32: 1>} : vector<8x16xi32>
    %cst_17 = arith.constant -2.000000e+00 : f32
    %cst_18 = arith.constant 2.000000e+01 : f32
    %21 = vector.broadcast %cst_17 : f32 to vector<8x16xf32>
    %22 = arith.maximumf %21, %19 : vector<8x16xf32>
    %23 = vector.broadcast %cst_18 : f32 to vector<8x16xf32>
    %24 = arith.minimumf %23, %22 : vector<8x16xf32>
    %c8_i32 = arith.constant 8 : i32
    %25 = vector.broadcast %c8_i32 : i32 to vector<8x16xi32>
    %26 = arith.cmpi sge, %20, %25 : vector<8x16xi32>
    %27 = arith.select %26, %24, %19 : vector<8x16xi1>, vector<8x16xf32>
    %c0_19 = arith.constant 0 : index
    %c0_20 = arith.constant 0 : index
    %28 = vector.load %arg8[%c0_19, %c0_20] : memref<8x16xf32, #tpu.memory_space<vmem>>, vector<8x16xf32>
    tpu.vector_store %arg8[%c0_19, %c0_20], %27 {strides = array<i32>} : memref<8x16xf32, #tpu.memory_space<vmem>>, vector<8x16xf32>,
    return
  }
  func.func @transform_0(%arg0: i32) -> (i32, i32) {
    %c0_i32 = arith.constant 0 : i32
    %c0_i32_0 = arith.constant 0 : i32
    return %arg0, %c0_i32 : i32, i32
  }
  func.func @transform_1(%arg0: i32) -> (i32, i32) {
    %c0_i32 = arith.constant 0 : i32
    %c0_i32_0 = arith.constant 0 : i32
    %c0_i32_1 = arith.constant 0 : i32
    return %c0_i32, %c0_i32_0 : i32, i32
  }
  func.func @transform_2(%arg0: i32) -> (i32, i32) {
    %c0_i32 = arith.constant 0 : i32
    %c0_i32_0 = arith.constant 0 : i32
    %c0_i32_1 = arith.constant 0 : i32
    return %c0_i32, %c0_i32_0 : i32, i32
  }
  func.func @transform_3(%arg0: i32) -> (i32, i32) {
    %c0_i32 = arith.constant 0 : i32
    %c0_i32_0 = arith.constant 0 : i32
    %c0_i32_1 = arith.constant 0 : i32
    return %c0_i32, %c0_i32_0 : i32, i32
  }
  func.func @transform_4(%arg0: i32) -> (i32, i32) {
    %c0_i32 = arith.constant 0 : i32
    %c0_i32_0 = arith.constant 0 : i32
    %c0_i32_1 = arith.constant 0 : i32
    return %c0_i32, %c0_i32_0 : i32, i32
  }
  func.func @transform_5(%arg0: i32) -> (i32, i32) {
    %c0_i32 = arith.constant 0 : i32
    %c0_i32_0 = arith.constant 0 : i32
    %c0_i32_1 = arith.constant 0 : i32
    return %c0_i32, %c0_i32_0 : i32, i32
  }
  func.func @transform_6(%arg0: i32) -> (i32, i32) {
    %c0_i32 = arith.constant 0 : i32
    %c0_i32_0 = arith.constant 0 : i32
    %c0_i32_1 = arith.constant 0 : i32
    return %c0_i32, %c0_i32_0 : i32, i32
  }
  func.func @transform_7(%arg0: i32) -> (i32, i32) {
    %c0_i32 = arith.constant 0 : i32
    %c0_i32_0 = arith.constant 0 : i32
    return %arg0, %c0_i32 : i32, i32
  }
}

</mosaic_0001>

<bundles_post_ra>
// kernel: tpu_custom_call.1
= control target key start
LH: loop header
LB: loop body
LE: loop exit
PB: predicated region body
PF: predicated region fallthrough
CT: control target
= control target key end

     0   :  { %12 = vsyncpa [#allocation3], 0  ;;  %s310_s0 = inlined_call_operand.hbm [shape: f32[8,16], index: 0, kind: input, shape index: {}]   ;;  %s311_s1 = inlined_call_operand.vmem [shape: f32[16,32], index: 1, kind: input, shape index: {}]   ;;  %s312_s2 = inlined_call_operand.vmem [shape: f32[1,32], index: 2, kind: input, shape index: {}]   ;;  %s313_s3 = inlined_call_operand.vmem [shape: f32[32,32], index: 3, kind: input, shape index: {}]   ;;  %s314_s4 = inlined_call_operand.vmem [shape: f32[1,32], index: 4, kind: input, shape index: {}]   ;;  %s315_s5 = inlined_call_operand.vmem [shape: f32[32,16], index: 5, kind: input, shape index: {}]   ;;  %s316_s6 = inlined_call_operand.vmem [shape: f32[1,16], index: 6, kind: input, shape index: {}]   ;;  %s317_s7 = inlined_call_operand.hbm [shape: f32[8,16], index: 7, kind: output, shape index: {}]  }
   0x1   :  { %13 = vsyncpa [#allocation4], 0  ;;  %s19_s26 = sshll.u32 %s310_s0, 4  ;;  %s221_s27 = smov [#allocation2]   ;;  %s20_s26 = int_to_ptr.hbm [resolvable:$true] %s19_s26 }
   0x2   :  { %s21_s28 = sshll.u32 %s221_s27, 4  ;;  %s22_s28 = int_to_ptr.vmem [resolvable:$true] %s21_s28 }
   0x3   :  { %24 = dma.hbm_to_vmem [thread:$0]  %s20_s26, 128, %s22_s28, [#allocation3]  }
   0x4   :  { %217 = dma.done.wait [#allocation3], 128  }
   0x5   :  { %218 = vsyncadd [#allocation3], 4294967168  ;;  %v43_v0 = vld [vmem:[%s311_s1 + $0x8] sm:$0xff]  ;;  %v42_v1 = vld [vmem:[%s311_s1] sm:$0xff]  ;;  %vm48_vm0 = vcmask 130048   ;;  %vm81_vm1 = vcmask 261120   ;;  %v137_v19 = vlaneseq }
   0x6   :  { %66 = vmatpush.msra.mxu0 %v43_v0  ;;  %v41_v2 = vld [vmem:[#allocation2] sm:$0xff]  ;;  %v76_v3 = vld [vmem:[%s313_s3 + $0x18] sm:$0xff]  ;;  %v75_v4 = vld [vmem:[%s313_s3 + $0x10] sm:$0xff]  ;;  %s222_s28 = smov [#allocation5]   ;;  %s151_s8 = sshll.u32 %s317_s7, 4  ;;  %s152_s8 = int_to_ptr.hbm [resolvable:$true] %s151_s8 }
   0x7   :  { %97 = vmatpush.msra.mxu1 %v76_v3  ;;  %v74_v5 = vld [vmem:[%s313_s3 + $0x8] sm:$0xff]  ;;  %v73_v6 = vld [vmem:[%s313_s3] sm:$0xff]  ;;  %v109_v7 = vld [vmem:[%s315_s5 + $0x18] sm:$0xff]  ;;  %v138_v22 = vand.u32 127, %v137_v19 }
   0x8   :  { %67 = vmatpush.msra.mxu0 %v42_v1  ;;  %129 = vmatpush.msra.mxu2 %v109_v7  ;;  %v166_v8 = vld [vmem:[%s312_s2] ss:$0 sm:$0xff]  ;;  %v108_v12 = vld [vmem:[%s315_s5 + $0x10] sm:$0xff]  ;;  %v107_v13 = vld [vmem:[%s315_s5 + $0x8] sm:$0xff] }
   0x9   :  { %161 = vmatmul.msk.f32.vlgmr.msra.gmra.mxu0 %vm48_vm0, %v41_v2  ;;  %98 = vmatpush.msra.mxu1 %v75_v4  ;;  %v106_v14 = vld [vmem:[%s315_s5] sm:$0xff]  ;;  %s149_s5 = sshll.u32 %s222_s28, 4  ;;  %vm141_vm2 = vcmp.ge.s32.totalorder %v138_v22, 8  ;;  %s150_s5 = int_to_ptr.vmem [resolvable:$true] %s149_s5 }
   0xa   :  { %130 = vmatpush.msra.mxu2 %v108_v12  ;;  %v167_v15 = vld [vmem:[%s314_s4] ss:$0 sm:$0xff] }
   0xb   :  { %99 = vmatpush.msra.mxu1 %v74_v5  ;;  %v168_v20 = vld [vmem:[%s316_s6] ss:$0 sm:$0xff] }
   0xc   :  { %131 = vmatpush.msra.mxu2 %v107_v13 }
   0xd   :  { %100 = vmatpush.msra.mxu1 %v73_v6 }
   0xe   :  { %132 = vmatpush.msra.mxu2 %v106_v14 }
  0x86   :  { %v69_v9 = vpop.f32.mrf.mxu0 }
  0x87   :  { %v70_v10 = vadd.f32 %v166_v8, %v69_v9 }
  0x89   :  { %v72_v11 = vmax.f32 %v70_v10, 0.0 }
  0x8b   :  { %162 = vmatmul.msk.f32.vlgmr.msra.gmra.mxu1 %vm81_vm1, %v72_v11 }
 0x108   :  { %v102_v16 = vpop.f32.mrf.mxu1 }
 0x109   :  { %v103_v17 = vadd.f32 %v167_v15, %v102_v16 }
 0x10b   :  { %v105_v18 = vmax.f32 %v103_v17, 0.0 }
 0x10d   :  { %163 = vmatmul.msk.f32.vlgmr.msra.gmra.mxu2 %vm81_vm1, %v105_v18 }
 0x190   :  { %v134_v21 = vpop.f32.mrf.mxu2 }
 0x191   :  { %v135_v23 = vadd.f32 %v168_v20, %v134_v21 }
 0x193   :  { %v139_v24 = vmax.f32 %v135_v23, -2.0 }
 0x195   :  { %v140_v25 = vmin.f32 %v139_v24, 20.0 }
 0x197   :  { %v142_v26 = vsel %vm141_vm2, %v140_v25, %v135_v23 }
 0x198   :  { %143 = vst.msk [vmem:[#allocation5] sm:$0xff] %vm48_vm0, %v142_v26 }
 0x199   :  { %154 = dma.vmem_to_hbm [thread:$0]  %s150_s5, 128, %s152_s8, [#allocation4]  }
 0x19a   :  { %219 = dma.done.wait [#allocation4], 128  }
 0x19b   :  { %220 = vsyncadd [#allocation4], 4294967168 }
 0x19c   :  { %159 = vsyncpa [#allocation3], 1 }
 0x19d   :  { %160 = vsyncpa [#allocation4], 1 }

</bundles_post_ra>
